<compile_context>
chip_gen: v7x
topology: tpu7x:2x2x1
jax: 0.10.0
libtpu: 0.0.40
codegen_flags: <defaults>
</compile_context>

<pallas_src>
import functools

import numpy as np

import jax
import jax.numpy as jnp
from jax import lax
from jax.experimental import pallas as pl
from jax.experimental.pallas import tpu as pltpu


def _round_up(n, q):
    return ((n + q - 1) // q) * q


def _vmem_budget_bytes():
    """Generation-aware VMEM budget: ~100 MiB on v5e/v6e (128 MiB), ~51 MiB on v7x (64 MiB)."""
    cap = 64 * 1024 * 1024
    try:
        cap = int(pltpu.get_tpu_info().vmem_capacity_bytes)
    except Exception:
        pass   # not on TPU / older jax: keep the conservative 64 MiB figure
    return min(int(cap * 0.8), cap - 8 * 1024 * 1024)


def _kernel2_vmem_bytes(tq, tk, d, h, dv, csize, osize):
    """Rough double-buffered working-set estimate for the fused attention kernel."""
    bufs = 2 * ((tq * d + tk * h + tk * dv) * csize + tk * 4 + tq * dv * osize)
    bufs += 2 * d * h * csize                        # W (constant block index; budget 2 buffers)
    scratch = tq * h * csize + 2 * tq * 4 + tq * dv * 4
    interm = 3 * tq * tk * 4                         # s / p / exp f32 temporaries
    return bufs + scratch + interm


# -----------------------------------------------------------------------------
# Kernel 1: key-side projection   x2rv = relu(x2 @ W) * v      (computed once)
# -----------------------------------------------------------------------------
def _key_projection_kernel(x2_ref, w_ref, v_ref, out_ref):
    x2r = jnp.maximum(
        jnp.dot(x2_ref[0], w_ref[...], preferred_element_type=jnp.float32), 0.0)
    out_ref[0] = (x2r * v_ref[...]).astype(out_ref.dtype)           # (tk, H)


# -----------------------------------------------------------------------------
# Kernel 2: fused scores + masked online softmax + attention read
#   grid = (B, q_tiles, k_tiles); k axis last / 'arbitrary' (accumulator axis)
# -----------------------------------------------------------------------------
def _attn_read_kernel(vkt_ref, x1_ref, k_ref, val_ref, bias_ref, w_ref, out_ref,
                      x1r_sc, m_sc, l_sc, acc_sc, *, approx_recip):
    b = pl.program_id(0)
    k_idx = pl.program_id(2)

    @pl.when(k_idx == 0)
    def _init():
        # Query projection once per (batch, q-tile); reused across all key tiles.
        x1r = jnp.maximum(
            jnp.dot(x1_ref[0], w_ref[...], preferred_element_type=jnp.float32), 0.0)
        x1r_sc[...] = x1r.astype(x1r_sc.dtype)
        m_sc[...] = jnp.full_like(m_sc, -jnp.inf)
        l_sc[...] = jnp.zeros_like(l_sc)
        acc_sc[...] = jnp.zeros_like(acc_sc)

    # Skip trailing fully-masked (padded) key tiles for this batch row.
    @pl.when(k_idx < vkt_ref[b])
    def _step():
        # Scores tile: contract the shared hidden dim of (tq,H) x (tk,H) — no explicit transpose.
        s = lax.dot_general(
            x1r_sc[...], k_ref[0],
            dimension_numbers=(((1,), (1,)), ((), ())),
            preferred_element_type=jnp.float32)                      # (tq, tk) f32
        s = s + bias_ref[0]                                          # additive mask bias (1, tk)

        # Online softmax update (all statistics in f32).
        m_prev = m_sc[...]
        m_new = jnp.maximum(m_prev, jnp.max(s, axis=-1, keepdims=True))
        corr = jnp.exp(m_prev - m_new)
        p = jnp.exp(s - m_new)                                       # (tq, tk) f32
        l_sc[...] = corr * l_sc[...] + jnp.sum(p, axis=-1, keepdims=True)
        acc_sc[...] = corr * acc_sc[...] + jnp.dot(
            p.astype(val_ref.dtype), val_ref[0],
            preferred_element_type=jnp.float32)                      # (tq, Dv)
        m_sc[...] = m_new

    @pl.when(k_idx == pl.num_programs(2) - 1)
    def _finalize():
        # Deferred normalization: one reciprocal per row (EUP), no L1*L2 divide pass.
        inv_l = pl.reciprocal(l_sc[...], approx=approx_recip)
        out_ref[0] = (acc_sc[...] * inv_l).astype(out_ref.dtype)


def get_attention_hiddens(x1, x2, x2_mask, w, v, x3=None, *,
                          compute_dtype=jnp.bfloat16,
                          q_tile_target=512, k_tile_target=None):
    """x1:[B,L1,D], x2:[B,L2,D], x2_mask:[B,L2] (nonzero = masked), w:[D,H], v:[1,H]."""
    if x3 is None:
        x3 = x2                               # value tensor; DMA'd to the kernel exactly once
    B, L1, D = x1.shape
    _, L2, _ = x2.shape
    H = w.shape[1]
    Dv = x3.shape[-1]

    cdt = np.dtype(compute_dtype)
    exact = cdt == np.dtype(np.float32)
    out_dtype = x1.dtype
    csize = cdt.itemsize
    osize = np.dtype(out_dtype).itemsize

    budget = _vmem_budget_bytes()
    small_vmem = budget < 80 * 1024 * 1024    # v7x-class parts (64 MiB physical)

    # ---- tile selection (generation- and dtype-aware) ----
    q_quantum = 8 if exact else 16            # bf16 packs 2 rows per sublane
    k_quantum = 128                           # lane quantum (mask bias / scores last dim)
    if k_tile_target is None:
        k_tile_target = 256 if small_vmem else 512
    if small_vmem:
        q_tile_target = min(q_tile_target, 384)

    l1_q = _round_up(L1, q_quantum)
    l2_q = _round_up(L2, k_quantum)
    dv_pad = _round_up(Dv, 128)               # lane-dense (unmasked) output stores

    tq = min(_round_up(q_tile_target, q_quantum), l1_q)
    tk = min(_round_up(k_tile_target, k_quantum), l2_q)

    # Shrink tiles until the double-buffered working set fits comfortably in the budget.
    while (_kernel2_vmem_bytes(tq, tk, D, H, dv_pad, csize, osize) > int(0.7 * budget)
           and (tk > k_quantum or tq > q_quantum)):
        if tk > k_quantum:
            tk = max(k_quantum, ((tk // 2) // k_quantum) * k_quantum)
        else:
            tq = max(q_quantum, ((tq // 2) // q_quantum) * q_quantum)

    # Megacore occupancy: B and the q axis shard across TensorCores; keep >= 2 parallel units.
    while B * ((l1_q + tq - 1) // tq) < 2 and tq > q_quantum:
        tq = max(q_quantum, ((tq // 2) // q_quantum) * q_quantum)

    L1p = _round_up(L1, tq)
    L2p = _round_up(L2, tk)
    q_tiles = L1p // tq
    nkt = L2p // tk
    vmem_limit = int(budget)

    # ---- pad operands (no full-extent tiling fallback; padded keys get -1e30 bias) ----
    x1c = jnp.pad(x1.astype(cdt), ((0, 0), (0, L1p - L1), (0, 0)))
    x2c = jnp.pad(x2.astype(cdt), ((0, 0), (0, L2p - L2), (0, 0)))
    xvc = jnp.pad(x3.astype(cdt), ((0, 0), (0, L2p - L2), (0, dv_pad - Dv)))
    w_c = w.astype(cdt)
    v_f = v.astype(jnp.float32)

    # Additive mask bias hoisted out of the hot loop: masked -> -1e30 (underflows to 0 in exp,
    # matching the -inf masked_fill for any row with at least one visible key).
    bias = x2_mask.astype(jnp.float32) * jnp.float32(-1e30)                  # (B, L2)
    bias = jnp.pad(bias, ((0, 0), (0, L2p - L2)), constant_values=-1e30)     # (B, L2p)

    # Per-batch count of key tiles up to (and including) the last tile with a visible key;
    # trailing fully-masked tiles are skipped in the kernel (scalar prefetch).
    visible_tile = (bias > jnp.float32(-1e29)).reshape(B, nkt, tk).any(axis=-1)
    tile_idx = jnp.arange(nkt, dtype=jnp.int32)
    vkt = jnp.max(jnp.where(visible_tile, tile_idx + 1, 0), axis=-1)
    vkt = jnp.maximum(vkt, 1).astype(jnp.int32)   # fully-masked rows -> uniform over tile 0
    bias3 = bias.reshape(B, 1, L2p)               # (B,1,L2p): (full-extent, 128-mult) block dims

    # ---- kernel 1: key-side projection, computed once (not per query tile) ----
    key_cost = pl.CostEstimate(
        flops=int(2 * B * L2p * D * H),
        transcendentals=0,
        bytes_accessed=int(B * L2p * (D + H) * csize + D * H * csize + H * 4))

    x2rv = pl.pallas_call(
        _key_projection_kernel,
        out_shape=jax.ShapeDtypeStruct((B, L2p, H), cdt),
        grid_spec=pltpu.PrefetchScalarGridSpec(
            num_scalar_prefetch=0,
            grid=(B, nkt),
            in_specs=[
                pl.BlockSpec((1, tk, D), lambda b, k: (b, k, 0)),
                pl.BlockSpec((D, H), lambda b, k: (0, 0)),
                pl.BlockSpec((1, H), lambda b, k: (0, 0)),
            ],
            out_specs=pl.BlockSpec((1, tk, H), lambda b, k: (b, k, 0)),
        ),
        compiler_params=pltpu.CompilerParams(
            dimension_semantics=("parallel", "parallel"),
            vmem_limit_bytes=vmem_limit),
        cost_estimate=key_cost,
    )(x2c, w_c, v_f)

    # ---- kernel 2: fused masked-softmax attention read ----
    attn_cost = pl.CostEstimate(
        flops=int(2 * B * (L1p * D * H + L1p * L2p * H + L1p * L2p * dv_pad)),
        transcendentals=int(B * L1p * L2p),
        bytes_accessed=int(
            B * L1p * D * csize                               # queries (read once)
            + q_tiles * B * L2p * (H + dv_pad) * csize        # K/V re-streamed per q tile
            + q_tiles * B * L2p * 4                           # mask bias per q tile
            + D * H * csize                                    # W
            + B * L1p * dv_pad * osize))                       # output

    kernel = functools.partial(_attn_read_kernel, approx_recip=not exact)

    out_padded = pl.pallas_call(
        kernel,
        out_shape=jax.ShapeDtypeStruct((B, L1p, dv_pad), out_dtype),
        grid_spec=pltpu.PrefetchScalarGridSpec(
            num_scalar_prefetch=1,
            grid=(B, q_tiles, nkt),
            in_specs=[
                pl.BlockSpec((1, tq, D), lambda b, q, k, vk: (b, q, 0)),        # x1 queries
                pl.BlockSpec((1, tk, H),                                        # pre-scaled keys
                             lambda b, q, k, vk: (b, jnp.minimum(k, vk[b] - 1), 0)),
                pl.BlockSpec((1, tk, dv_pad),                                   # values (== x2)
                             lambda b, q, k, vk: (b, jnp.minimum(k, vk[b] - 1), 0)),
                pl.BlockSpec((1, 1, tk),                                        # additive mask bias
                             lambda b, q, k, vk: (b, 0, jnp.minimum(k, vk[b] - 1))),
                pl.BlockSpec((D, H), lambda b, q, k, vk: (0, 0)),               # W (fetched once)
            ],
            out_specs=pl.BlockSpec((1, tq, dv_pad), lambda b, q, k, vk: (b, q, 0)),
            scratch_shapes=[
                pltpu.VMEM((tq, H), cdt),              # x1r, computed once per (b, q-tile)
                pltpu.VMEM((tq, 1), jnp.float32),      # running max
                pltpu.VMEM((tq, 1), jnp.float32),      # running denominator
                pltpu.VMEM((tq, dv_pad), jnp.float32),  # running numerator
            ]),
        compiler_params=pltpu.CompilerParams(
            dimension_semantics=("parallel", "parallel", "arbitrary"),
            vmem_limit_bytes=vmem_limit),
        cost_estimate=attn_cost,
    )(vkt, x1c, x2rv, xvc, bias3, w_c)

    return out_padded[:, :L1, :Dv]


def _reference(x1, x2, x2_mask, w, v, x3=None):
    if x3 is None:
        x3 = x2
    hi = lax.Precision.HIGHEST
    x1r = jax.nn.relu(jnp.einsum("bld,dh->blh", x1, w, precision=hi))
    x2r = jax.nn.relu(jnp.einsum("bld,dh->blh", x2, w, precision=hi))
    scores = jnp.einsum("bqh,bkh->bqk", x1r, x2r * v[None, :, :], precision=hi)
    scores = jnp.where(x2_mask[:, None, :] > 0.5, -jnp.inf, scores)
    alpha = jax.nn.softmax(scores, axis=-1)
    return jnp.einsum("bqk,bkd->bqd", alpha, x3, precision=hi)


if __name__ == "__main__":
    # ---------------- Test 1: small module-shaped inputs ----------------
    key = jax.random.PRNGKey(0)
    B, L1, L2, D, H = 2, 8, 8, 32, 32
    k1, k2, k3 = jax.random.split(key, 3)
    x1 = jax.random.normal(k1, (B, L1, D), dtype=jnp.float32)
    x2 = jax.random.normal(k2, (B, L2, D), dtype=jnp.float32)
    # mask: last 2 positions of batch 0 masked; batch 1 fully visible
    x2_mask = jnp.zeros((B, L2), dtype=jnp.float32).at[0, L2 - 2:].set(1.0)
    # Deterministic params: W ~ nn.Linear-style init (uniform), v = ones (module __init__)
    bound = 1.0 / (D ** 0.5)
    w = jax.random.uniform(k3, (D, H), minval=-bound, maxval=bound, dtype=jnp.float32)
    v = jnp.ones((1, H), dtype=jnp.float32)

    ref = _reference(x1, x2, x2_mask, w, v)

    out_f32 = jax.block_until_ready(
        get_attention_hiddens(x1, x2, x2_mask, w, v, compute_dtype=jnp.float32))
    assert out_f32.shape == (B, L1, D)
    assert jnp.allclose(out_f32, ref, atol=1e-3, rtol=1e-3), "f32 kernel mismatch (small)"

    out_bf16 = jax.block_until_ready(get_attention_hiddens(x1, x2, x2_mask, w, v))
    assert out_bf16.shape == (B, L1, D)
    assert bool(jnp.all(jnp.isfinite(out_bf16)))
    assert jnp.allclose(out_bf16, ref, atol=2.5e-1, rtol=5e-2), "bf16 kernel diverged (small)"

    # ------- Test 2: ragged lengths, D/H >= 128, multi-tile k axis -------
    # Exercises padding, the (1,1,tk) bias blocks, lane-dense Dv handling and the
    # scalar-prefetch valid-k-tile skip (batch 0 has a fully-masked trailing key tile).
    B2, L1b, L2b, D2, H2 = 2, 70, 200, 128, 128
    k4, k5, k6 = jax.random.split(jax.random.PRNGKey(1), 3)
    y1 = jax.random.normal(k4, (B2, L1b, D2), dtype=jnp.float32)
    y2 = jax.random.normal(k5, (B2, L2b, D2), dtype=jnp.float32)
    y_mask = jnp.zeros((B2, L2b), dtype=jnp.float32).at[0, 100:].set(1.0)
    bound2 = 1.0 / (D2 ** 0.5)
    w2 = jax.random.uniform(k6, (D2, H2), minval=-bound2, maxval=bound2, dtype=jnp.float32)
    v2 = jnp.ones((1, H2), dtype=jnp.float32)

    ref2 = _reference(y1, y2, y_mask, w2, v2)

    out2_f32 = jax.block_until_ready(
        get_attention_hiddens(y1, y2, y_mask, w2, v2,
                              compute_dtype=jnp.float32, k_tile_target=128))
    assert out2_f32.shape == (B2, L1b, D2)
    assert jnp.allclose(out2_f32, ref2, atol=2e-3, rtol=2e-3), "f32 kernel mismatch (ragged)"

    out2_bf16 = jax.block_until_ready(
        get_attention_hiddens(y1, y2, y_mask, w2, v2, k_tile_target=128))
    assert out2_bf16.shape == (B2, L1b, D2)
    assert bool(jnp.all(jnp.isfinite(out2_bf16)))
    assert float(jnp.max(jnp.abs(out2_bf16 - ref2))) < 0.5, "bf16 kernel diverged (ragged)"

    print("KERNEL_OK")
</pallas_src>

<mosaic_0001>
module attributes {stable_mosaic.version = 11 : i64} {
  func.func @_key_projection_kernel(%arg0: i32, %arg1: i32, %arg2: memref<1x128x32xf32, #tpu.memory_space<vmem>>, %arg3: memref<32x32xf32, #tpu.memory_space<vmem>>, %arg4: memref<1x32xf32, #tpu.memory_space<vmem>>, %arg5: memref<1x128x32xf32, #tpu.memory_space<vmem>>) attributes {dimension_semantics = [#tpu.dimension_semantics<parallel>, #tpu.dimension_semantics<parallel>], iteration_bounds = array<i64: 2, 1>, scalar_prefetch = 0 : i64, scratch_operands = 0 : i64, tpu.core_type = #tpu.core_type<tc>, window_params = [{transform_indices = @transform_0, window_bounds = array<i64: 1, 128, 32>}, {pipeline_mode = #tpu.pipeline_mode<synchronous>, transform_indices = @transform_1, window_bounds = array<i64: 32, 32>}, {pipeline_mode = #tpu.pipeline_mode<synchronous>, transform_indices = @transform_2, window_bounds = array<i64: 1, 32>}, {transform_indices = @transform_3, window_bounds = array<i64: 1, 128, 32>}]} {
    %c0 = arith.constant 0 : index
    %c0_0 = arith.constant 0 : index
    %c0_1 = arith.constant 0 : index
    %0 = vector.load %arg2[%c0, %c0_0, %c0_1] : memref<1x128x32xf32, #tpu.memory_space<vmem>>, vector<1x128x32xf32>
    %1 = vector.shape_cast %0 : vector<1x128x32xf32> to vector<128x32xf32>
    %c0_2 = arith.constant 0 : index
    %c0_3 = arith.constant 0 : index
    %2 = vector.load %arg3[%c0_2, %c0_3] : memref<32x32xf32, #tpu.memory_space<vmem>>, vector<32x32xf32>
    %cst = arith.constant dense<0.000000e+00> : vector<128x32xf32>
    %3 = tpu.matmul %1, %2, %cst {dimension_numbers = #tpu.dot_dimension_numbers<[1], [0], [0], [1], [0, 0, 1, 1], [], []>} : vector<128x32xf32>, vector<32x32xf32>, vector<128x32xf32> -> vector<128x32xf32>
    %cst_4 = arith.constant 0.000000e+00 : f32
    %4 = vector.broadcast %cst_4 : f32 to vector<128x32xf32>
    %5 = arith.maximumf %3, %4 : vector<128x32xf32>
    %c0_5 = arith.constant 0 : index
    %c0_6 = arith.constant 0 : index
    %6 = vector.load %arg4[%c0_5, %c0_6] : memref<1x32xf32, #tpu.memory_space<vmem>>, vector<1x32xf32>
    %7 = vector.broadcast %6 : vector<1x32xf32> to vector<128x32xf32>
    %8 = arith.mulf %5, %7 : vector<128x32xf32>
    %c0_7 = arith.constant 0 : index
    %c0_8 = arith.constant 0 : index
    %c0_9 = arith.constant 0 : index
    %9 = vector.load %arg5[%c0_7, %c0_8, %c0_9] : memref<1x128x32xf32, #tpu.memory_space<vmem>>, vector<1x128x32xf32>
    %10 = vector.shape_cast %9 : vector<1x128x32xf32> to vector<128x32xf32>
    %11 = vector.shape_cast %8 : vector<128x32xf32> to vector<1x128x32xf32>
    tpu.vector_store %arg5[%c0_7, %c0_8, %c0_9], %11 {strides = array<i32>} : memref<1x128x32xf32, #tpu.memory_space<vmem>>, vector<1x128x32xf32>,
    return
  }
  func.func @transform_0(%arg0: i32, %arg1: i32) -> (i32, i32, i32) {
    %c0_i32 = arith.constant 0 : i32
    %c0_i32_0 = arith.constant 0 : i32
    return %arg0, %arg1, %c0_i32 : i32, i32, i32
  }
  func.func @transform_1(%arg0: i32, %arg1: i32) -> (i32, i32) {
    %c0_i32 = arith.constant 0 : i32
    %c0_i32_0 = arith.constant 0 : i32
    %c0_i32_1 = arith.constant 0 : i32
    return %c0_i32, %c0_i32_0 : i32, i32
  }
  func.func @transform_2(%arg0: i32, %arg1: i32) -> (i32, i32) {
    %c0_i32 = arith.constant 0 : i32
    %c0_i32_0 = arith.constant 0 : i32
    %c0_i32_1 = arith.constant 0 : i32
    return %c0_i32, %c0_i32_0 : i32, i32
  }
  func.func @transform_3(%arg0: i32, %arg1: i32) -> (i32, i32, i32) {
    %c0_i32 = arith.constant 0 : i32
    %c0_i32_0 = arith.constant 0 : i32
    return %arg0, %arg1, %c0_i32 : i32, i32, i32
  }
}

</mosaic_0001>

<bundles_post_ra>
// kernel: tpu_custom_call.1
= control target key start
LH: loop header
LB: loop body
LE: loop exit
PB: predicated region body
PF: predicated region fallthrough
CT: control target
= control target key end

     0   :  { %s728_s12 = smov 0   ;;  %s730_s13 = smov 0   ;;  %s851_s0 = inlined_call_operand.vmem [shape: f32[2,128,32], index: 0, kind: input, shape index: {}]   ;;  %s852_s1 = inlined_call_operand.vmem [shape: f32[32,32], index: 1, kind: input, shape index: {}]   ;;  %s853_s2 = inlined_call_operand.vmem [shape: f32[1,32], index: 2, kind: input, shape index: {}]   ;;  %s854_s3 = inlined_call_operand.vmem [shape: f32[2,128,32], index: 3, kind: output, shape index: {}]  }
   0x1   :  { %s732_s14 = smov 0  }
   0x2 LB: > { %s25_s15 = sadd.s32 1, %s702_s13  ;;  %p570_p0 = scmp.ge.s32.totalorder %s706_s14, 1  ;;  %s706_s14 = sphi %s732_s14, %s13_s14   ;;  %s702_s13 = sphi %s730_s13, %s856_s13   ;;  %s698_s12 = sphi %s728_s12, %s855_s12  }
   0x3   : > { %p27_p1 = scmp.ge.s32.totalorder %s25_s15, 2  ;;  %p158_p2 = scmp.lt.s32.totalorder %s706_s14, 3 }
   0x5   : > { %s858_s15 = smov (%p27_p1, %s25_s15), 0  ;;  %p159_p3 = pnand %p570_p0, %p158_p2 }
   0x6   : > { %v226_v0 = vld [vmem:[%s852_s1] sm:$0xff] (!%p159_p3)  ;;  %v227_v1 = vld [vmem:[%s852_s1 + $0x8] sm:$0xff] (!%p159_p3)  ;;  %v228_v2 = vld [vmem:[%s852_s1 + $0x10] sm:$0xff] (!%p159_p3)  ;;  %p191_p4 = scmp.lt.s32.totalorder (!%p159_p3), %s698_s12, 1  ;;  %vm230_vm0 = vcmask (!%p159_p3), 261120  }
   0x7   : > { %162 = sbr.rel (%p159_p3) target bundleno = 250 (0xfa), region = 32  ;;  %v648_v3 = vpack.c.bf16 (!%p159_p3), %v227_v1, %v226_v0  ;;  %v229_v4 = vld [vmem:[%s852_s1 + $0x18] sm:$0xff] (!%p159_p3)  ;;  %v591_v23 = vld [vmem:[%s853_s2] ss:$0 sm:$0xff] (!%p159_p3) }
   0x8   : > { %v652_v5 = vpack.c.bf16 (!%p159_p3), %v229_v4, %v228_v2 }
   0x9   : > { %649 = vmatprep.subr.bf16.mxu0 (!%p159_p3), %v648_v3  ;;  %656 = vmatprep.subr.bf16.mxu1 (!%p159_p3), %v648_v3 }
   0xa   : > { %651 = vmatpush3.bf16.msra.mxu0 (!%p159_p3), %v648_v3  ;;  %658 = vmatpush3.bf16.msra.mxu1 (!%p159_p3), %v648_v3 }
   0xb   : > { %653 = vmatprep.subr.bf16.mxu0 (!%p159_p3), %v652_v5  ;;  %657 = vmatprep.subr.bf16.mxu1 (!%p159_p3), %v652_v5 }
   0xe   : > { %s860_s12 = smov (!%p191_p4, %s698_s12), 1  ;;  %655 = vmatpush3.bf16.msra.mxu0 %v652_v5  ;;  %659 = vmatpush3.bf16.msra.mxu1 %v652_v5 }
   0xf   : > { %s594_s24 = sshll.u32 %s860_s12, 7 }
  0x10   : > { %s766_s27 = scalar_lea.vmem %s851_s0, %s594_s24  ;;  %s808_s5 = scalar_lea.vmem %s854_s3, %s594_s24 }
  0x11   : > { %v210_v6 = vld [vmem:[%s766_s27] sm:$0xff]  ;;  %v211_v8 = vld [vmem:[%s766_s27 + $0x8] sm:$0xff]  ;;  %v212_v10 = vld [vmem:[%s766_s27 + $0x10] sm:$0xff] }
  0x12   : > { %v218_v7 = vld [vmem:[%s766_s27 + $0x40] sm:$0xff]  ;;  %624 = vmatprep.mubr.msk.f32.mxu0 %vm230_vm0, %v210_v6  ;;  %v219_v9 = vld [vmem:[%s766_s27 + $0x48] sm:$0xff]  ;;  %v220_v11 = vld [vmem:[%s766_s27 + $0x50] sm:$0xff] }
  0x13   : > { %636 = vmatprep.mubr.msk.f32.mxu1 %vm230_vm0, %v218_v7  ;;  %625 = vmatmul.mubr.msk.f32.vlgmr.msra.gmra.mrb[0].mxu0 %vm230_vm0, %v211_v8  ;;  %v213_v12 = vld [vmem:[%s766_s27 + $0x18] sm:$0xff]  ;;  %v214_v14 = vld [vmem:[%s766_s27 + $0x20] sm:$0xff]  ;;  %v215_v16 = vld [vmem:[%s766_s27 + $0x28] sm:$0xff] }
  0x14   : > { %637 = vmatmul.mubr.msk.f32.vlgmr.msra.gmra.mrb[0].mxu1 %vm230_vm0, %v219_v9  ;;  %627 = vmatprep.mubr.msk.f32.mxu0 %vm230_vm0, %v212_v10  ;;  %v221_v13 = vld [vmem:[%s766_s27 + $0x58] sm:$0xff]  ;;  %v222_v15 = vld [vmem:[%s766_s27 + $0x60] sm:$0xff]  ;;  %v223_v17 = vld [vmem:[%s766_s27 + $0x68] sm:$0xff] }
  0x15   : > { %639 = vmatprep.mubr.msk.f32.mxu1 %vm230_vm0, %v220_v11  ;;  %v216_v18 = vld [vmem:[%s766_s27 + $0x30] sm:$0xff]  ;;  %v217_v20 = vld [vmem:[%s766_s27 + $0x38] sm:$0xff] }
  0x16   : > { %v224_v19 = vld [vmem:[%s766_s27 + $0x70] sm:$0xff]  ;;  %v225_v21 = vld [vmem:[%s766_s27 + $0x78] sm:$0xff] }
  0x17   : > { %628 = vmatmul.mubr.msk.f32.gmra.mrb[2].mxu0 %vm230_vm0, %v213_v12 }
  0x18   : > { %640 = vmatmul.mubr.msk.f32.gmra.mrb[2].mxu1 %vm230_vm0, %v221_v13  ;;  %630 = vmatprep.mubr.msk.f32.mxu0 %vm230_vm0, %v214_v14 }
  0x19   : > { %642 = vmatprep.mubr.msk.f32.mxu1 %vm230_vm0, %v222_v15 }
  0x1b   : > { %631 = vmatmul.mubr.msk.f32.gmra.mrb[4].mxu0 %vm230_vm0, %v215_v16 }
  0x1c   : > { %643 = vmatmul.mubr.msk.f32.gmra.mrb[4].mxu1 %vm230_vm0, %v223_v17  ;;  %633 = vmatprep.mubr.msk.f32.mxu0 %vm230_vm0, %v216_v18 }
  0x1d   : > { %645 = vmatprep.mubr.msk.f32.mxu1 %vm230_vm0, %v224_v19 }
  0x1f   : > { %634 = vmatmul.mubr.msk.f32.gmra.mrb[6].mxu0 %vm230_vm0, %v217_v20 }
  0x20   : > { %646 = vmatmul.mubr.msk.f32.gmra.mrb[6].mxu1 %vm230_vm0, %v225_v21 }
  0xe6   : > { %v626_v22 = vpop.f32.mrb[0].mxu0 }
  0xe7   : > { %v638_v24 = vpop.f32.mrb[0].mxu1  ;;  %v425_v25 = vmax.f32 %v626_v22, 0.0  ;;  %v345_v27 = vpop.f32.mrb[1].mxu0 }
  0xe8   : > { %v433_v26 = vmax.f32 %v638_v24, 0.0  ;;  %v385_v28 = vpop.f32.mrb[1].mxu1  ;;  %v424_v29 = vmax.f32 %v345_v27, 0.0 }
  0xe9   : > { %v432_v30 = vmax.f32 %v385_v28, 0.0  ;;  %v448_v31 = vmul.f32 %v591_v23, %v425_v25 }
  0xea   : > { %v456_v32 = vmul.f32 %v591_v23, %v433_v26  ;;  %v447_v33 = vmul.f32 %v591_v23, %v424_v29  ;;  %v629_v35 = vpop.f32.mrb[2].mxu0 }
  0xeb   : > { %v455_v34 = vmul.f32 %v591_v23, %v432_v30  ;;  %v641_v36 = vpop.f32.mrb[2].mxu1  ;;  %464 = vst.msk [vmem:[%s808_s5 + $0x8] sm:$0xff] %vm230_vm0, %v448_v31  ;;  %v427_v37 = vmax.f32 %v629_v35, 0.0  ;;  %v355_v39 = vpop.f32.mrb[3].mxu0 }
  0xec   : > { %472 = vst.msk [vmem:[%s808_s5 + $0x48] sm:$0xff] %vm230_vm0, %v456_v32  ;;  %v435_v38 = vmax.f32 %v641_v36, 0.0  ;;  %v395_v40 = vpop.f32.mrb[3].mxu1  ;;  %463 = vst.msk [vmem:[%s808_s5] sm:$0xff] %vm230_vm0, %v447_v33  ;;  %v426_v41 = vmax.f32 %v355_v39, 0.0 }
  0xed   : > { %471 = vst.msk [vmem:[%s808_s5 + $0x40] sm:$0xff] %vm230_vm0, %v455_v34  ;;  %v434_v42 = vmax.f32 %v395_v40, 0.0  ;;  %v450_v43 = vmul.f32 %v591_v23, %v427_v37 }
  0xee   : > { %v458_v44 = vmul.f32 %v591_v23, %v435_v38  ;;  %v449_v45 = vmul.f32 %v591_v23, %v426_v41  ;;  %v632_v47 = vpop.f32.mrb[4].mxu0 }
  0xef   : > { %v457_v46 = vmul.f32 %v591_v23, %v434_v42  ;;  %v644_v48 = vpop.f32.mrb[4].mxu1  ;;  %466 = vst.msk [vmem:[%s808_s5 + $0x18] sm:$0xff] %vm230_vm0, %v450_v43  ;;  %v429_v49 = vmax.f32 %v632_v47, 0.0  ;;  %v365_v51 = vpop.f32.mrb[5].mxu0 }
  0xf0   : > { %474 = vst.msk [vmem:[%s808_s5 + $0x58] sm:$0xff] %vm230_vm0, %v458_v44  ;;  %v437_v50 = vmax.f32 %v644_v48, 0.0  ;;  %v405_v52 = vpop.f32.mrb[5].mxu1  ;;  %465 = vst.msk [vmem:[%s808_s5 + $0x10] sm:$0xff] %vm230_vm0, %v449_v45  ;;  %v428_v53 = vmax.f32 %v365_v51, 0.0 }
  0xf1   : > { %473 = vst.msk [vmem:[%s808_s5 + $0x50] sm:$0xff] %vm230_vm0, %v457_v46  ;;  %v436_v54 = vmax.f32 %v405_v52, 0.0  ;;  %v452_v55 = vmul.f32 %v591_v23, %v429_v49 }
  0xf2   : > { %v460_v56 = vmul.f32 %v591_v23, %v437_v50  ;;  %v451_v57 = vmul.f32 %v591_v23, %v428_v53  ;;  %v635_v59 = vpop.f32.mrb[6].mxu0 }
  0xf3   : > { %v459_v58 = vmul.f32 %v591_v23, %v436_v54  ;;  %v647_v60 = vpop.f32.mrb[6].mxu1  ;;  %468 = vst.msk [vmem:[%s808_s5 + $0x28] sm:$0xff] %vm230_vm0, %v452_v55  ;;  %v431_v61 = vmax.f32 %v635_v59, 0.0  ;;  %v375_v63 = vpop.f32.mrb[7].mxu0 }
  0xf4   : > { %476 = vst.msk [vmem:[%s808_s5 + $0x68] sm:$0xff] %vm230_vm0, %v460_v56  ;;  %v439_v62 = vmax.f32 %v647_v60, 0.0  ;;  %v415_v0 = vpop.f32.mrb[7].mxu1  ;;  %467 = vst.msk [vmem:[%s808_s5 + $0x20] sm:$0xff] %vm230_vm0, %v451_v57  ;;  %v430_v1 = vmax.f32 %v375_v63, 0.0 }
  0xf5   : > { %475 = vst.msk [vmem:[%s808_s5 + $0x60] sm:$0xff] %vm230_vm0, %v459_v58  ;;  %v438_v2 = vmax.f32 %v415_v0, 0.0  ;;  %v454_v3 = vmul.f32 %v591_v23, %v431_v61 }
  0xf6   : > { %v462_v4 = vmul.f32 %v591_v23, %v439_v62  ;;  %v453_v5 = vmul.f32 %v591_v23, %v430_v1 }
  0xf7   : > { %v461_v6 = vmul.f32 %v591_v23, %v438_v2  ;;  %470 = vst.msk [vmem:[%s808_s5 + $0x38] sm:$0xff] %vm230_vm0, %v454_v3 }
  0xf8   : > { %478 = vst.msk [vmem:[%s808_s5 + $0x78] sm:$0xff] %vm230_vm0, %v462_v4  ;;  %469 = vst.msk [vmem:[%s808_s5 + $0x30] sm:$0xff] %vm230_vm0, %v453_v5 }
  0xf9   : > { %477 = vst.msk [vmem:[%s808_s5 + $0x70] sm:$0xff] %vm230_vm0, %v461_v6 }
  0xfa PF: > { %s13_s14 = sadd.s32 1, %s706_s14   ;;  %s855_s12 = smov %s702_s13 }
  0xfb   : > { %p10_p5 = scmp.ge.s32.totalorder %s13_s14, 4   ;;  %s856_s13 = smov %s858_s15 }
  0xfd   :  { %12 = sbr.rel (!%p10_p5) target bundleno = 2 (0x2), region = 62 }

</bundles_post_ra>
